<compile_context>
chip_gen: v5e
topology: v5e:2x2
jax: 0.10.0
libtpu: 0.0.40
codegen_flags: <defaults>
</compile_context>

<pallas_src>
import jax
import jax.numpy as jnp
from jax.experimental import pallas as pl
from jax.experimental.pallas import tpu as pltpu

HIDDEN = 128
N_OUT = 2
OUT_STORE = 8  # stored output lanes (>= N_OUT); narrow writeback (32 B/row f32)


def _round_up(v, m):
    return ((v + m - 1) // m) * m


def qnet_kernel(x_ref, w1_ref, b1_ref, w2_ref, b2_ref, w3_ref, b3_ref, o_ref):
    # ---- Layer 1 on the VPU: K=4 contraction as 4 broadcast-FMAs ----
    x = x_ref[...]            # (TB, 4) f32
    w1 = w1_ref[...]          # (4, 128) f32
    h1 = b1_ref[...] + x[:, 0:1] * w1[0:1, :]
    h1 = h1 + x[:, 1:2] * w1[1:2, :]
    h1 = h1 + x[:, 2:3] * w1[2:3, :]
    h1 = h1 + x[:, 3:4] * w1[3:4, :]
    h1 = jnp.maximum(h1, 0.0)                                  # (TB, 128) f32

    # ---- Layer 2 on the MXU (bf16 operands by default, f32 accumulation) ----
    h2 = jnp.dot(h1.astype(w2_ref.dtype), w2_ref[...],
                 preferred_element_type=jnp.float32)
    h2 = jnp.maximum(h2 + b2_ref[...], 0.0)                    # (TB, 128) f32

    # ---- Layer 3 on the MXU, narrow (OUT_STORE-lane) store ----
    out = jnp.dot(h2.astype(w3_ref.dtype), w3_ref[...],
                  preferred_element_type=jnp.float32)           # (TB, OUT_STORE)
    o_ref[...] = (out + b3_ref[...]).astype(o_ref.dtype)        # (TB, OUT_STORE)


def qnet_forward(x, params, *, tb=1024, mxu_dtype=jnp.bfloat16, min_grid_steps=1):
    """x: (B, 4) f32. params: w1,b1,w2,b2,w3,b3 (weights (in,out), biases (1,out)).

    tb: batch tile (sweep 512/1024/2048 for replay batches; per-step VMEM < ~1 MiB).
    mxu_dtype: bfloat16 (default; native MXU on v5e/v6e/v7x) or float32 (exact).
    min_grid_steps: set to 2 on v7x (2 TensorCores) so the parallel axis has >=2
      iterations even when the whole batch fits one tile; keep 1 on v5e/v6e.
    """
    B = x.shape[0]
    w1, b1 = params["w1"], params["b1"]
    w2, b2 = params["w2"], params["b2"]
    w3, b3 = params["w3"], params["b3"]

    # Batch tile: multiple of 8, never larger than the (8-aligned) batch.
    b8 = _round_up(B, 8)
    tb_eff = min(_round_up(tb, 8), b8)
    if min_grid_steps > 1:
        tb_eff = min(tb_eff, max(8, _round_up(pl.cdiv(b8, min_grid_steps), 8)))
    b_pad = _round_up(b8, tb_eff)
    if b_pad != B:
        x = jnp.pad(x, ((0, b_pad - B), (0, 0)))

    # Narrow output: pad layer-3 params only to OUT_STORE lanes (zeros beyond N_OUT).
    w3p = jnp.pad(w3, ((0, 0), (0, OUT_STORE - N_OUT))).astype(mxu_dtype)
    b3p = jnp.pad(b3, ((0, 0), (0, OUT_STORE - N_OUT)))
    w2c = w2.astype(mxu_dtype)

    grid = (b_pad // tb_eff,)
    const = lambda i: (0, 0)  # weights/biases: one block, VMEM-resident across steps

    out = pl.pallas_call(
        qnet_kernel,
        out_shape=jax.ShapeDtypeStruct((b_pad, OUT_STORE), jnp.float32),
        grid=grid,
        in_specs=[
            pl.BlockSpec((tb_eff, 4), lambda i: (i, 0)),          # x
            pl.BlockSpec(w1.shape, const),                        # w1 (4,128)   f32
            pl.BlockSpec(b1.shape, const),                        # b1 (1,128)   f32
            pl.BlockSpec(w2c.shape, const),                       # w2 (128,128) mxu_dtype
            pl.BlockSpec(b2.shape, const),                        # b2 (1,128)   f32
            pl.BlockSpec(w3p.shape, const),                       # w3 (128,8)   mxu_dtype
            pl.BlockSpec(b3p.shape, const),                       # b3 (1,8)     f32
        ],
        out_specs=pl.BlockSpec((tb_eff, OUT_STORE), lambda i: (i, 0)),
        compiler_params=pltpu.CompilerParams(
            dimension_semantics=("parallel",)),
    )(x, w1, b1, w2c, b2, w3p, b3p)

    # Strip batch padding and the (small) padded output lanes.
    return out[:B, :N_OUT]


def init_params(key):
    """Deterministic init mimicking torch.nn.Linear default (U[-1/sqrt(fan_in), ...])."""
    dims = [(4, HIDDEN), (HIDDEN, HIDDEN), (HIDDEN, N_OUT)]
    params = {}
    keys = jax.random.split(key, 2 * len(dims))
    for i, (fan_in, fan_out) in enumerate(dims):
        bound = 1.0 / (fan_in ** 0.5)
        params[f"w{i + 1}"] = jax.random.uniform(
            keys[2 * i], (fan_in, fan_out), minval=-bound, maxval=bound,
            dtype=jnp.float32)
        params[f"b{i + 1}"] = jax.random.uniform(
            keys[2 * i + 1], (1, fan_out), minval=-bound, maxval=bound,
            dtype=jnp.float32)
    return params


def qnet_reference(x, params):
    h1 = jnp.maximum(x @ params["w1"] + params["b1"], 0.0)
    h2 = jnp.maximum(h1 @ params["w2"] + params["b2"], 0.0)
    return h2 @ params["w3"] + params["b3"]


if __name__ == "__main__":
    key = jax.random.PRNGKey(0)
    pkey, xkey_small, xkey_big = jax.random.split(key, 3)
    params = init_params(pkey)

    # Small "acting" batch (CartPole obs dim 4). Exact f32 MXU path, tight tolerance.
    B_small = 8
    x_small = jax.random.normal(xkey_small, (B_small, 4), dtype=jnp.float32)
    out_small = jax.block_until_ready(
        qnet_forward(x_small, params, mxu_dtype=jnp.float32))
    ref_small = qnet_reference(x_small, params)
    assert out_small.shape == (B_small, N_OUT)
    assert jnp.allclose(out_small, ref_small, atol=1e-5, rtol=1e-5), \
        "Pallas output mismatch vs JAX reference (small batch, f32)"

    # Replay-style batch, non-multiple of the tile: exercises multi-step grid + padding.
    B_big = 200
    x_big = jax.random.normal(xkey_big, (B_big, 4), dtype=jnp.float32)
    ref_big = qnet_reference(x_big, params)

    out_f32 = jax.block_until_ready(
        qnet_forward(x_big, params, tb=64, mxu_dtype=jnp.float32))
    assert out_f32.shape == (B_big, N_OUT)
    assert jnp.allclose(out_f32, ref_big, atol=1e-5, rtol=1e-5), \
        "Pallas output mismatch vs JAX reference (large batch, f32)"

    # Default bf16 MXU path (v5e/v6e/v7x throughput); f32 accumulation keeps error small.
    out_bf16 = jax.block_until_ready(qnet_forward(x_big, params, tb=64))
    assert jnp.allclose(out_bf16, ref_big, atol=5e-2, rtol=5e-2), \
        "Pallas bf16 output mismatch vs JAX reference"

    # v7x-style call: force >=2 parallel grid steps even when one tile would fit.
    out_2tc = jax.block_until_ready(
        qnet_forward(x_big, params, min_grid_steps=2))
    assert jnp.allclose(out_2tc, ref_big, atol=5e-2, rtol=5e-2), \
        "Pallas bf16 output mismatch vs JAX reference (min_grid_steps=2)"

    print("KERNEL_OK")
</pallas_src>

<mosaic_0001>
module attributes {stable_mosaic.version = 11 : i64} {
  func.func @qnet_kernel(%arg0: i32, %arg1: memref<8x4xf32, #tpu.memory_space<vmem>>, %arg2: memref<4x128xf32, #tpu.memory_space<vmem>>, %arg3: memref<1x128xf32, #tpu.memory_space<vmem>>, %arg4: memref<128x128xf32, #tpu.memory_space<vmem>>, %arg5: memref<1x128xf32, #tpu.memory_space<vmem>>, %arg6: memref<128x8xf32, #tpu.memory_space<vmem>>, %arg7: memref<1x8xf32, #tpu.memory_space<vmem>>, %arg8: memref<8x8xf32, #tpu.memory_space<vmem>>) attributes {dimension_semantics = [#tpu.dimension_semantics<parallel>], iteration_bounds = array<i64: 1>, scalar_prefetch = 0 : i64, scratch_operands = 0 : i64, tpu.core_type = #tpu.core_type<tc>, window_params = [{transform_indices = @transform_0, window_bounds = array<i64: 8, 4>}, {pipeline_mode = #tpu.pipeline_mode<synchronous>, transform_indices = @transform_1, window_bounds = array<i64: 4, 128>}, {pipeline_mode = #tpu.pipeline_mode<synchronous>, transform_indices = @transform_2, window_bounds = array<i64: 1, 128>}, {pipeline_mode = #tpu.pipeline_mode<synchronous>, transform_indices = @transform_3, window_bounds = array<i64: 128, 128>}, {pipeline_mode = #tpu.pipeline_mode<synchronous>, transform_indices = @transform_4, window_bounds = array<i64: 1, 128>}, {pipeline_mode = #tpu.pipeline_mode<synchronous>, transform_indices = @transform_5, window_bounds = array<i64: 128, 8>}, {pipeline_mode = #tpu.pipeline_mode<synchronous>, transform_indices = @transform_6, window_bounds = array<i64: 1, 8>}, {transform_indices = @transform_7, window_bounds = array<i64: 8, 8>}]} {
    %c0 = arith.constant 0 : index
    %c0_0 = arith.constant 0 : index
    %0 = vector.load %arg1[%c0, %c0_0] : memref<8x4xf32, #tpu.memory_space<vmem>>, vector<8x4xf32>
    %c0_1 = arith.constant 0 : index
    %c0_2 = arith.constant 0 : index
    %1 = vector.load %arg2[%c0_1, %c0_2] : memref<4x128xf32, #tpu.memory_space<vmem>>, vector<4x128xf32>
    %c0_3 = arith.constant 0 : index
    %c0_4 = arith.constant 0 : index
    %2 = vector.load %arg3[%c0_3, %c0_4] : memref<1x128xf32, #tpu.memory_space<vmem>>, vector<1x128xf32>
    %3 = vector.extract_strided_slice %0 {offsets = [0, 0], sizes = [8, 1], strides = [1, 1]} : vector<8x4xf32> to vector<8x1xf32>
    %4 = vector.extract_strided_slice %1 {offsets = [0, 0], sizes = [1, 128], strides = [1, 1]} : vector<4x128xf32> to vector<1x128xf32>
    %5 = vector.broadcast %3 : vector<8x1xf32> to vector<8x128xf32>
    %6 = vector.broadcast %4 : vector<1x128xf32> to vector<8x128xf32>
    %7 = arith.mulf %5, %6 : vector<8x128xf32>
    %8 = vector.broadcast %2 : vector<1x128xf32> to vector<8x128xf32>
    %9 = arith.addf %8, %7 : vector<8x128xf32>
    %10 = vector.extract_strided_slice %0 {offsets = [0, 1], sizes = [8, 1], strides = [1, 1]} : vector<8x4xf32> to vector<8x1xf32>
    %11 = vector.extract_strided_slice %1 {offsets = [1, 0], sizes = [1, 128], strides = [1, 1]} : vector<4x128xf32> to vector<1x128xf32>
    %12 = vector.broadcast %10 : vector<8x1xf32> to vector<8x128xf32>
    %13 = vector.broadcast %11 : vector<1x128xf32> to vector<8x128xf32>
    %14 = arith.mulf %12, %13 : vector<8x128xf32>
    %15 = arith.addf %9, %14 : vector<8x128xf32>
    %16 = vector.extract_strided_slice %0 {offsets = [0, 2], sizes = [8, 1], strides = [1, 1]} : vector<8x4xf32> to vector<8x1xf32>
    %17 = vector.extract_strided_slice %1 {offsets = [2, 0], sizes = [1, 128], strides = [1, 1]} : vector<4x128xf32> to vector<1x128xf32>
    %18 = vector.broadcast %16 : vector<8x1xf32> to vector<8x128xf32>
    %19 = vector.broadcast %17 : vector<1x128xf32> to vector<8x128xf32>
    %20 = arith.mulf %18, %19 : vector<8x128xf32>
    %21 = arith.addf %15, %20 : vector<8x128xf32>
    %22 = vector.extract_strided_slice %0 {offsets = [0, 3], sizes = [8, 1], strides = [1, 1]} : vector<8x4xf32> to vector<8x1xf32>
    %23 = vector.extract_strided_slice %1 {offsets = [3, 0], sizes = [1, 128], strides = [1, 1]} : vector<4x128xf32> to vector<1x128xf32>
    %24 = vector.broadcast %22 : vector<8x1xf32> to vector<8x128xf32>
    %25 = vector.broadcast %23 : vector<1x128xf32> to vector<8x128xf32>
    %26 = arith.mulf %24, %25 : vector<8x128xf32>
    %27 = arith.addf %21, %26 : vector<8x128xf32>
    %cst = arith.constant 0.000000e+00 : f32
    %28 = vector.broadcast %cst : f32 to vector<8x128xf32>
    %29 = arith.maximumf %27, %28 : vector<8x128xf32>
    %c0_5 = arith.constant 0 : index
    %c0_6 = arith.constant 0 : index
    %30 = vector.load %arg4[%c0_5, %c0_6] : memref<128x128xf32, #tpu.memory_space<vmem>>, vector<128x128xf32>
    %cst_7 = arith.constant dense<0.000000e+00> : vector<8x128xf32>
    %31 = tpu.matmul %29, %30, %cst_7 {dimension_numbers = #tpu.dot_dimension_numbers<[1], [0], [0], [1], [0, 0, 1, 1], [], []>} : vector<8x128xf32>, vector<128x128xf32>, vector<8x128xf32> -> vector<8x128xf32>
    %c0_8 = arith.constant 0 : index
    %c0_9 = arith.constant 0 : index
    %32 = vector.load %arg5[%c0_8, %c0_9] : memref<1x128xf32, #tpu.memory_space<vmem>>, vector<1x128xf32>
    %33 = vector.broadcast %32 : vector<1x128xf32> to vector<8x128xf32>
    %34 = arith.addf %31, %33 : vector<8x128xf32>
    %cst_10 = arith.constant 0.000000e+00 : f32
    %35 = vector.broadcast %cst_10 : f32 to vector<8x128xf32>
    %36 = arith.maximumf %34, %35 : vector<8x128xf32>
    %c0_11 = arith.constant 0 : index
    %c0_12 = arith.constant 0 : index
    %37 = vector.load %arg6[%c0_11, %c0_12] : memref<128x8xf32, #tpu.memory_space<vmem>>, vector<128x8xf32>
    %cst_13 = arith.constant dense<0.000000e+00> : vector<8x8xf32>
    %38 = tpu.matmul %36, %37, %cst_13 {dimension_numbers = #tpu.dot_dimension_numbers<[1], [0], [0], [1], [0, 0, 1, 1], [], []>} : vector<8x128xf32>, vector<128x8xf32>, vector<8x8xf32> -> vector<8x8xf32>
    %c0_14 = arith.constant 0 : index
    %c0_15 = arith.constant 0 : index
    %39 = vector.load %arg7[%c0_14, %c0_15] : memref<1x8xf32, #tpu.memory_space<vmem>>, vector<1x8xf32>
    %40 = vector.broadcast %39 : vector<1x8xf32> to vector<8x8xf32>
    %41 = arith.addf %38, %40 : vector<8x8xf32>
    %c0_16 = arith.constant 0 : index
    %c0_17 = arith.constant 0 : index
    %42 = vector.load %arg8[%c0_16, %c0_17] : memref<8x8xf32, #tpu.memory_space<vmem>>, vector<8x8xf32>
    tpu.vector_store %arg8[%c0_16, %c0_17], %41 {strides = array<i32>} : memref<8x8xf32, #tpu.memory_space<vmem>>, vector<8x8xf32>,
    return
  }
  func.func @transform_0(%arg0: i32) -> (i32, i32) {
    %c0_i32 = arith.constant 0 : i32
    %c0_i32_0 = arith.constant 0 : i32
    return %arg0, %c0_i32 : i32, i32
  }
  func.func @transform_1(%arg0: i32) -> (i32, i32) {
    %c0_i32 = arith.constant 0 : i32
    %c0_i32_0 = arith.constant 0 : i32
    %c0_i32_1 = arith.constant 0 : i32
    return %c0_i32, %c0_i32_0 : i32, i32
  }
  func.func @transform_2(%arg0: i32) -> (i32, i32) {
    %c0_i32 = arith.constant 0 : i32
    %c0_i32_0 = arith.constant 0 : i32
    %c0_i32_1 = arith.constant 0 : i32
    return %c0_i32, %c0_i32_0 : i32, i32
  }
  func.func @transform_3(%arg0: i32) -> (i32, i32) {
    %c0_i32 = arith.constant 0 : i32
    %c0_i32_0 = arith.constant 0 : i32
    %c0_i32_1 = arith.constant 0 : i32
    return %c0_i32, %c0_i32_0 : i32, i32
  }
  func.func @transform_4(%arg0: i32) -> (i32, i32) {
    %c0_i32 = arith.constant 0 : i32
    %c0_i32_0 = arith.constant 0 : i32
    %c0_i32_1 = arith.constant 0 : i32
    return %c0_i32, %c0_i32_0 : i32, i32
  }
  func.func @transform_5(%arg0: i32) -> (i32, i32) {
    %c0_i32 = arith.constant 0 : i32
    %c0_i32_0 = arith.constant 0 : i32
    %c0_i32_1 = arith.constant 0 : i32
    return %c0_i32, %c0_i32_0 : i32, i32
  }
  func.func @transform_6(%arg0: i32) -> (i32, i32) {
    %c0_i32 = arith.constant 0 : i32
    %c0_i32_0 = arith.constant 0 : i32
    %c0_i32_1 = arith.constant 0 : i32
    return %c0_i32, %c0_i32_0 : i32, i32
  }
  func.func @transform_7(%arg0: i32) -> (i32, i32) {
    %c0_i32 = arith.constant 0 : i32
    %c0_i32_0 = arith.constant 0 : i32
    return %arg0, %c0_i32 : i32, i32
  }
}

</mosaic_0001>

<bundles_post_ra>
// kernel: tpu_custom_call.1
= control target key start
LH: loop header
LB: loop body
LE: loop exit
PB: predicated region body
PF: predicated region fallthrough
CT: control target
= control target key end

     0   :  { %v201_v2 = vmov 0   ;;  %v202_v3 = vmov 2   ;;  %s360_s0 = inlined_call_operand.vmem [shape: f32[8,4], index: 0, kind: input, shape index: {}]   ;;  %s361_s1 = inlined_call_operand.vmem [shape: f32[4,128], index: 1, kind: input, shape index: {}]   ;;  %s362_s2 = inlined_call_operand.vmem [shape: f32[1,128], index: 2, kind: input, shape index: {}]   ;;  %s363_s3 = inlined_call_operand.vmem [shape: f32[128,128], index: 3, kind: input, shape index: {}]   ;;  %s364_s4 = inlined_call_operand.vmem [shape: f32[1,128], index: 4, kind: input, shape index: {}]   ;;  %s365_s5 = inlined_call_operand.vmem [shape: f32[128,8], index: 5, kind: input, shape index: {}]   ;;  %s366_s6 = inlined_call_operand.vmem [shape: f32[1,8], index: 6, kind: input, shape index: {}]   ;;  %s367_s7 = inlined_call_operand.hbm [shape: f32[8,8], index: 7, kind: output, shape index: {}]  }
   0x1   :  { %v27_v0 = vld [vmem:[%s360_s0] sm:$0xff]  ;;  %v78_v1 = vld [vmem:[%s363_s3 + $0x78] sm:$0xff]  ;;  %167 = vset.pattern.permute.xlu0 %v201_v2  ;;  %169 = vset.pattern.permute.xlu1 %v202_v3  ;;  %v77_v4 = vld [vmem:[%s363_s3 + $0x70] sm:$0xff] }
   0x2   :  { %32 = vperm.xlu0 %167, %v27_v0   ;;  %49 = vperm.xlu1 %169, %v27_v0   ;;  %v76_v5 = vld [vmem:[%s363_s3 + $0x68] sm:$0xff] }
   0x3   :  { %83 = vmatpush.msra.mxu0 %v78_v1 }
   0x4   :  { %12 = vsyncpa [#allocation3], 0  ;;  %v75_v6 = vld [vmem:[%s363_s3 + $0x60] sm:$0xff]  ;;  %v74_v7 = vld [vmem:[%s363_s3 + $0x58] sm:$0xff]  ;;  %v203_v8 = vmov 1   ;;  %v204_v9 = vmov 3  }
   0x5   :  { %84 = vmatpush.msra.mxu0 %v77_v4  ;;  %v73_v10 = vld [vmem:[%s363_s3 + $0x50] sm:$0xff]  ;;  %v72_v11 = vld [vmem:[%s363_s3 + $0x48] sm:$0xff]  ;;  %v71_v12 = vld [vmem:[%s363_s3 + $0x40] sm:$0xff]  ;;  %s205_s22 = smov [#allocation2]   ;;  %s153_s26 = sshll.u32 %s367_s7, 4  ;;  %vm144_vm0 = vcmask 64512   ;;  %s154_s26 = int_to_ptr.hbm [resolvable:$true] %s153_s26 }
   0x6   :  { %v70_v13 = vld [vmem:[%s363_s3 + $0x38] sm:$0xff]  ;;  %v69_v14 = vld [vmem:[%s363_s3 + $0x30] sm:$0xff]  ;;  %v68_v15 = vld [vmem:[%s363_s3 + $0x28] sm:$0xff]  ;;  %s151_s23 = sshll.u32 %s205_s22, 4  ;;  %s152_s23 = int_to_ptr.vmem [resolvable:$true] %s151_s23 }
   0x7   :  { %85 = vmatpush.msra.mxu0 %v76_v5  ;;  %v67_v16 = vld [vmem:[%s363_s3 + $0x20] sm:$0xff]  ;;  %v66_v17 = vld [vmem:[%s363_s3 + $0x18] sm:$0xff]  ;;  %v65_v18 = vld [vmem:[%s363_s3 + $0x10] sm:$0xff] }
   0x8   :  { %v64_v19 = vld [vmem:[%s363_s3 + $0x8] sm:$0xff]  ;;  %v63_v20 = vld [vmem:[%s363_s3] sm:$0xff]  ;;  %v119_v21 = vld [vmem:[%s365_s5 + $0x78] sm:$0xff] }
   0x9   :  { %86 = vmatpush.msra.mxu0 %v75_v6  ;;  %v118_v22 = vld [vmem:[%s365_s5 + $0x70] sm:$0xff]  ;;  %124 = vmatpush.msra.mxu1 %v119_v21  ;;  %v117_v23 = vld [vmem:[%s365_s5 + $0x68] sm:$0xff]  ;;  %v116_v24 = vld [vmem:[%s365_s5 + $0x60] sm:$0xff] }
   0xa   :  { %168 = vset.pattern.permute.xlu0 %v203_v8  ;;  %170 = vset.pattern.permute.xlu1 %v204_v9  ;;  %v115_v25 = vld [vmem:[%s365_s5 + $0x58] sm:$0xff]  ;;  %v114_v26 = vld [vmem:[%s365_s5 + $0x50] sm:$0xff]  ;;  %v113_v27 = vld [vmem:[%s365_s5 + $0x48] sm:$0xff] }
   0xb   :  { %42 = vperm.xlu0 %168, %v27_v0   ;;  %56 = vperm.xlu1 %170, %v27_v0   ;;  %v28_v28 = vld [vmem:[%s361_s1] sm:$0xf]  ;;  %v111_v33 = vld [vmem:[%s365_s5 + $0x38] sm:$0xff]  ;;  %v110_v34 = vld [vmem:[%s365_s5 + $0x30] sm:$0xff] }
   0xc   :  { %87 = vmatpush.msra.mxu0 %v74_v7  ;;  %125 = vmatpush.msra.mxu1 %v118_v22  ;;  %v112_v31 = vld [vmem:[%s365_s5 + $0x40] sm:$0xff]  ;;  %v35_v32 = vperm.slane %v28_v28, 0  ;;  %v45_v37 = vperm.slane %v28_v28, 1  ;;  %v109_v38 = vld [vmem:[%s365_s5 + $0x28] sm:$0xff]  ;;  %v52_v39 = vperm.slane %v28_v28, 2  ;;  %v59_v40 = vperm.slane %v28_v28, 3 }
   0xd   :  { %v172_v35 = vld [vmem:[%s362_s2] ss:$0 sm:$0xff]  ;;  %v107_v46 = vld [vmem:[%s365_s5 + $0x18] sm:$0xff]  ;;  %v106_v53 = vld [vmem:[%s365_s5 + $0x10] sm:$0xff] }
   0xe   :  { %88 = vmatpush.msra.mxu0 %v73_v10  ;;  %126 = vmatpush.msra.mxu1 %v117_v23  ;;  %v108_v41 = vld [vmem:[%s365_s5 + $0x20] sm:$0xff]  ;;  %v105_v54 = vld [vmem:[%s365_s5 + $0x8] sm:$0xff] }
   0xf   :  { %v104_v55 = vld [vmem:[%s365_s5] sm:$0xff] }
  0x10   :  { %89 = vmatpush.msra.mxu0 %v72_v11  ;;  %127 = vmatpush.msra.mxu1 %v116_v24  ;;  %v173_v56 = vld [vmem:[%s364_s4] ss:$0 sm:$0xff] }
  0x11   :  { %v174_v60 = vld [vmem:[%s366_s6] ss:$0 sm:$0xff] }
  0x12   :  { %90 = vmatpush.msra.mxu0 %v71_v12  ;;  %128 = vmatpush.msra.mxu1 %v115_v25 }
  0x13   :  { %171 = vset.pattern.permute.xlu0 %v204_v9 }
  0x14   :  { %91 = vmatpush.msra.mxu0 %v70_v13  ;;  %129 = vmatpush.msra.mxu1 %v114_v26 }
  0x16   :  { %92 = vmatpush.msra.mxu0 %v69_v14  ;;  %130 = vmatpush.msra.mxu1 %v113_v27 }
  0x18   :  { %93 = vmatpush.msra.mxu0 %v68_v15  ;;  %131 = vmatpush.msra.mxu1 %v112_v31 }
  0x1a   :  { %94 = vmatpush.msra.mxu0 %v67_v16  ;;  %132 = vmatpush.msra.mxu1 %v111_v33 }
  0x1c   :  { %95 = vmatpush.msra.mxu0 %v66_v17  ;;  %133 = vmatpush.msra.mxu1 %v110_v34 }
  0x1e   :  { %96 = vmatpush.msra.mxu0 %v65_v18  ;;  %134 = vmatpush.msra.mxu1 %v109_v38 }
  0x20   :  { %97 = vmatpush.msra.mxu0 %v64_v19  ;;  %135 = vmatpush.msra.mxu1 %v108_v41 }
  0x22   :  { %98 = vmatpush.msra.mxu0 %v63_v20  ;;  %136 = vmatpush.msra.mxu1 %v107_v46 }
  0x24   :  { %137 = vmatpush.msra.mxu1 %v106_v53 }
  0x26   :  { %138 = vmatpush.msra.mxu1 %v105_v54 }
  0x28   :  { %139 = vmatpush.msra.mxu1 %v104_v55 }
  0x74   :  { %v33_v29 = vpop.permute.xlu0 %32  ;;  %v50_v30 = vpop.permute.xlu1 %49 }
  0x75   :  { %v36_v36 = vmul.f32 %v35_v32, %v33_v29  ;;  %v53_v47 = vmul.f32 %v52_v39, %v50_v30 }
  0x77   :  { %v40_v44 = vadd.f32 %v172_v35, %v36_v36 }
  0x7d   :  { %v43_v42 = vpop.permute.xlu0 %42  ;;  %v57_v43 = vpop.permute.xlu1 %56 }
  0x7e   :  { %v46_v45 = vmul.f32 %v45_v37, %v43_v42  ;;  %v60_v49 = vmul.f32 %v59_v40, %v57_v43 }
  0x80   :  { %v47_v48 = vadd.f32 %v46_v45, %v40_v44 }
  0x82   :  { %v54_v50 = vadd.f32 %v53_v47, %v47_v48 }
  0x84   :  { %v61_v51 = vadd.f32 %v60_v49, %v54_v50 }
  0x86   :  { %v62_v52 = vmax.f32 %v61_v51, 0.0 }
  0x88   :  { %99 = vmatmul.f32.vlgmr.msra.gmra.mxu0 %v62_v52 }
 0x105   :  { %v100_v57 = vpop.f32.mrf.mxu0 }
 0x106   :  { %v101_v58 = vadd.f32 %v173_v56, %v100_v57 }
 0x108   :  { %v103_v59 = vmax.f32 %v101_v58, 0.0 }
 0x10a   :  { %140 = vmatmul.f32.vlgmr.msra.gmra.mxu1 %v103_v59 }
 0x187   :  { %v141_v61 = vpop.f32.mrf.mxu1 }
 0x188   :  { %v142_v62 = vadd.f32 %v174_v60, %v141_v61 }
 0x18a   :  { %145 = vst.msk [vmem:[#allocation2] sm:$0xff] %vm144_vm0, %v142_v62 }
 0x18b   :  { %156 = dma.vmem_to_hbm [thread:$0]  %s152_s23, 128, %s154_s26, [#allocation3]  }
 0x18c   :  { %199 = dma.done.wait [#allocation3], 128  }
 0x18d   :  { %200 = vsyncadd [#allocation3], 4294967168 }
 0x18e   :  { %161 = vsyncpa [#allocation3], 1 }

</bundles_post_ra>
